<compile_context>
chip_gen: v7x
topology: tpu7x:2x2x1
jax: 0.10.0
libtpu: 0.0.40
codegen_flags: <defaults>
</compile_context>

<pallas_src>
import jax
import jax.numpy as jnp
from jax.experimental import pallas as pl
from jax.experimental.pallas import tpu as pltpu

_ONE_SIXTH = 1.0 / 6.0
_THREE_SIXTHS = 3.0 * _ONE_SIXTH


def _fused_kernel(x2_ref, wt_ref, x3_ref, out_ref):
    # x2_ref : (B*K,)     float32, SMEM (scalars)
    # wt_ref : (K, N)     float32, VMEM (pre-transposed torch Linear weight)
    # x3_ref : (B, M, N)  float32, VMEM   (M = C*H)
    # out_ref: (B, M, N)  float32, VMEM
    B, M, N = out_ref.shape
    K = wt_ref.shape[0]

    for b in range(B):  # B=2, unrolled at trace time
        # v1_b = sum_k x2[b,k] * wt[k,:]  as scalar-splat FMAs (no MXU, no XLU).
        v1 = x2_ref[b * K + 0] * wt_ref[0:1, :]           # (1, N)
        for k in range(1, K):
            v1 = v1 + x2_ref[b * K + k] * wt_ref[k:k + 1, :]

        # TODO(synk): `lstm` is undefined in the reference module; v3/v4 have
        # no defined semantics, so v4 is taken as v2 (identity).
        v2 = x3_ref[b] + v1                               # (M, N) + (1, N)

        # (clamp_min(v2 + 3, 0) + 1) / 6  ==  max(v2*(1/6) + 3*(1/6), 0) + 1/6
        out_ref[b] = jnp.maximum(v2 * _ONE_SIXTH + _THREE_SIXTHS, 0.0) + _ONE_SIXTH


def model_forward(x2, wt, x3):
    """x2: (B, K) f32, wt: (K, N) f32 (pre-transposed weight), x3: (B, C, H, N) f32."""
    B, K = x2.shape
    N = wt.shape[1]
    _, C, H, Wd = x3.shape
    assert Wd == N, "trailing dim of x3 must match linear output features"
    M = C * H

    x3_flat = x3.reshape(B, M, N)        # glue reshape (plain JAX, outside the kernel)
    x2_flat = x2.reshape(B * K)          # scalars -> SMEM

    out_flat = pl.pallas_call(
        _fused_kernel,
        out_shape=jax.ShapeDtypeStruct((B, M, N), jnp.float32),
        in_specs=[
            pl.BlockSpec(memory_space=pltpu.MemorySpace.SMEM),   # x2 scalars
            pl.BlockSpec(memory_space=pltpu.MemorySpace.VMEM),   # wt
            pl.BlockSpec(memory_space=pltpu.MemorySpace.VMEM),   # x3
        ],
        out_specs=pl.BlockSpec(memory_space=pltpu.MemorySpace.VMEM),
    )(x2_flat, wt, x3_flat)

    return out_flat.reshape(B, C, H, N)


def reference_forward(x2, w, x3):
    v1 = x2 @ w.T                                  # (B, N)
    v2 = v1[:, None, None, :] + x3                 # broadcast like torch
    v4 = v2                                        # lstm treated as identity
    v5 = v4 + 3.0
    v6 = jnp.maximum(v5, 0.0) + 1.0
    return v6 / 6.0


if __name__ == "__main__":
    key = jax.random.PRNGKey(0)
    k1, k2, k3 = jax.random.split(key, 3)

    B, K, N = 2, 3, 8
    C, H = 3, 7

    x2 = jax.random.normal(k1, (B, K), dtype=jnp.float32)
    x3 = jax.random.normal(k2, (B, C, H, N), dtype=jnp.float32)
    # Deterministic Linear(3, 8, bias=False) weight, torch-style (out, in).
    w = (jax.random.uniform(k3, (N, K), dtype=jnp.float32) - 0.5) * (2.0 / (K ** 0.5))
    wt = w.T                     # stored once in (K, N) layout, as at module init

    out = model_forward(x2, wt, x3)
    jax.block_until_ready(out)

    ref = reference_forward(x2, w, x3)
    assert out.shape == (B, C, H, N)
    assert jnp.allclose(out, ref, atol=1e-5, rtol=1e-5)

    print("KERNEL_OK")
</pallas_src>

<mosaic_0001>
module attributes {stable_mosaic.version = 11 : i64} {
  func.func @_fused_kernel(%arg0: memref<6xf32, #tpu.memory_space<smem>>, %arg1: memref<3x8xf32, #tpu.memory_space<vmem>>, %arg2: memref<2x21x8xf32, #tpu.memory_space<vmem>>, %arg3: memref<2x21x8xf32, #tpu.memory_space<vmem>>) attributes {dimension_semantics = [], scalar_prefetch = 0 : i64, scratch_operands = 0 : i64, tpu.core_type = #tpu.core_type<tc>} {
    %c0 = arith.constant 0 : index
    %0 = memref.load %arg0[%c0] : memref<6xf32, #tpu.memory_space<smem>>
    %c0_0 = arith.constant 0 : index
    %c0_1 = arith.constant 0 : index
    %1 = vector.load %arg1[%c0_0, %c0_1] : memref<3x8xf32, #tpu.memory_space<vmem>>, vector<1x8xf32>
    %2 = vector.broadcast %0 : f32 to vector<1x8xf32>
    %3 = arith.mulf %2, %1 : vector<1x8xf32>
    %c1 = arith.constant 1 : index
    %4 = memref.load %arg0[%c1] : memref<6xf32, #tpu.memory_space<smem>>
    %c1_2 = arith.constant 1 : index
    %c0_3 = arith.constant 0 : index
    %5 = vector.load %arg1[%c1_2, %c0_3] : memref<3x8xf32, #tpu.memory_space<vmem>>, vector<1x8xf32>
    %6 = vector.broadcast %4 : f32 to vector<1x8xf32>
    %7 = arith.mulf %6, %5 : vector<1x8xf32>
    %8 = arith.addf %3, %7 : vector<1x8xf32>
    %c2 = arith.constant 2 : index
    %9 = memref.load %arg0[%c2] : memref<6xf32, #tpu.memory_space<smem>>
    %c2_4 = arith.constant 2 : index
    %c0_5 = arith.constant 0 : index
    %10 = vector.load %arg1[%c2_4, %c0_5] : memref<3x8xf32, #tpu.memory_space<vmem>>, vector<1x8xf32>
    %11 = vector.broadcast %9 : f32 to vector<1x8xf32>
    %12 = arith.mulf %11, %10 : vector<1x8xf32>
    %13 = arith.addf %8, %12 : vector<1x8xf32>
    %c0_6 = arith.constant 0 : index
    %c0_7 = arith.constant 0 : index
    %c0_8 = arith.constant 0 : index
    %14 = vector.load %arg2[%c0_6, %c0_7, %c0_8] : memref<2x21x8xf32, #tpu.memory_space<vmem>>, vector<1x21x8xf32>
    %15 = vector.shape_cast %14 : vector<1x21x8xf32> to vector<21x8xf32>
    %16 = vector.broadcast %13 : vector<1x8xf32> to vector<21x8xf32>
    %17 = arith.addf %15, %16 : vector<21x8xf32>
    %cst = arith.constant 0.166666672 : f32
    %18 = vector.broadcast %cst : f32 to vector<21x8xf32>
    %19 = arith.mulf %17, %18 : vector<21x8xf32>
    %cst_9 = arith.constant 5.000000e-01 : f32
    %20 = vector.broadcast %cst_9 : f32 to vector<21x8xf32>
    %21 = arith.addf %19, %20 : vector<21x8xf32>
    %cst_10 = arith.constant 0.000000e+00 : f32
    %22 = vector.broadcast %cst_10 : f32 to vector<21x8xf32>
    %23 = arith.maximumf %21, %22 : vector<21x8xf32>
    %cst_11 = arith.constant 0.166666672 : f32
    %24 = vector.broadcast %cst_11 : f32 to vector<21x8xf32>
    %25 = arith.addf %23, %24 : vector<21x8xf32>
    %c0_12 = arith.constant 0 : index
    %c0_13 = arith.constant 0 : index
    %c0_14 = arith.constant 0 : index
    %26 = vector.load %arg3[%c0_12, %c0_13, %c0_14] : memref<2x21x8xf32, #tpu.memory_space<vmem>>, vector<1x21x8xf32>
    %27 = vector.shape_cast %26 : vector<1x21x8xf32> to vector<21x8xf32>
    %28 = vector.shape_cast %25 : vector<21x8xf32> to vector<1x21x8xf32>
    tpu.vector_store %arg3[%c0_12, %c0_13, %c0_14], %28 {strides = array<i32>} : memref<2x21x8xf32, #tpu.memory_space<vmem>>, vector<1x21x8xf32>,
    %c3 = arith.constant 3 : index
    %29 = memref.load %arg0[%c3] : memref<6xf32, #tpu.memory_space<smem>>
    %c0_15 = arith.constant 0 : index
    %c0_16 = arith.constant 0 : index
    %30 = vector.load %arg1[%c0_15, %c0_16] : memref<3x8xf32, #tpu.memory_space<vmem>>, vector<1x8xf32>
    %31 = vector.broadcast %29 : f32 to vector<1x8xf32>
    %32 = arith.mulf %31, %30 : vector<1x8xf32>
    %c4 = arith.constant 4 : index
    %33 = memref.load %arg0[%c4] : memref<6xf32, #tpu.memory_space<smem>>
    %c1_17 = arith.constant 1 : index
    %c0_18 = arith.constant 0 : index
    %34 = vector.load %arg1[%c1_17, %c0_18] : memref<3x8xf32, #tpu.memory_space<vmem>>, vector<1x8xf32>
    %35 = vector.broadcast %33 : f32 to vector<1x8xf32>
    %36 = arith.mulf %35, %34 : vector<1x8xf32>
    %37 = arith.addf %32, %36 : vector<1x8xf32>
    %c5 = arith.constant 5 : index
    %38 = memref.load %arg0[%c5] : memref<6xf32, #tpu.memory_space<smem>>
    %c2_19 = arith.constant 2 : index
    %c0_20 = arith.constant 0 : index
    %39 = vector.load %arg1[%c2_19, %c0_20] : memref<3x8xf32, #tpu.memory_space<vmem>>, vector<1x8xf32>
    %40 = vector.broadcast %38 : f32 to vector<1x8xf32>
    %41 = arith.mulf %40, %39 : vector<1x8xf32>
    %42 = arith.addf %37, %41 : vector<1x8xf32>
    %c1_21 = arith.constant 1 : index
    %c0_22 = arith.constant 0 : index
    %c0_23 = arith.constant 0 : index
    %43 = vector.load %arg2[%c1_21, %c0_22, %c0_23] : memref<2x21x8xf32, #tpu.memory_space<vmem>>, vector<1x21x8xf32>
    %44 = vector.shape_cast %43 : vector<1x21x8xf32> to vector<21x8xf32>
    %45 = vector.broadcast %42 : vector<1x8xf32> to vector<21x8xf32>
    %46 = arith.addf %44, %45 : vector<21x8xf32>
    %cst_24 = arith.constant 0.166666672 : f32
    %47 = vector.broadcast %cst_24 : f32 to vector<21x8xf32>
    %48 = arith.mulf %46, %47 : vector<21x8xf32>
    %cst_25 = arith.constant 5.000000e-01 : f32
    %49 = vector.broadcast %cst_25 : f32 to vector<21x8xf32>
    %50 = arith.addf %48, %49 : vector<21x8xf32>
    %cst_26 = arith.constant 0.000000e+00 : f32
    %51 = vector.broadcast %cst_26 : f32 to vector<21x8xf32>
    %52 = arith.maximumf %50, %51 : vector<21x8xf32>
    %cst_27 = arith.constant 0.166666672 : f32
    %53 = vector.broadcast %cst_27 : f32 to vector<21x8xf32>
    %54 = arith.addf %52, %53 : vector<21x8xf32>
    %c1_28 = arith.constant 1 : index
    %c0_29 = arith.constant 0 : index
    %c0_30 = arith.constant 0 : index
    %55 = vector.load %arg3[%c1_28, %c0_29, %c0_30] : memref<2x21x8xf32, #tpu.memory_space<vmem>>, vector<1x21x8xf32>
    %56 = vector.shape_cast %55 : vector<1x21x8xf32> to vector<21x8xf32>
    %57 = vector.shape_cast %54 : vector<21x8xf32> to vector<1x21x8xf32>
    tpu.vector_store %arg3[%c1_28, %c0_29, %c0_30], %57 {strides = array<i32>} : memref<2x21x8xf32, #tpu.memory_space<vmem>>, vector<1x21x8xf32>,
    return
  }
}

</mosaic_0001>

<bundles_post_ra>
// kernel: tpu_custom_call.1
= control target key start
LH: loop header
LB: loop body
LE: loop exit
PB: predicated region body
PF: predicated region fallthrough
CT: control target
= control target key end

     0   :  { %8 = vsyncpa [#allocation3], 0  ;;  %s224_s0 = inlined_call_operand.vmem [shape: f32[6], index: 0, kind: input, shape index: {}]   ;;  %s225_s1 = inlined_call_operand.vmem [shape: f32[3,8], index: 1, kind: input, shape index: {}]   ;;  %s226_s2 = inlined_call_operand.vmem [shape: f32[2,21,8], index: 2, kind: input, shape index: {}]   ;;  %s227_s3 = inlined_call_operand.vmem [shape: f32[2,21,8], index: 3, kind: output, shape index: {}]  }
   0x1   :  { %s15_s14 = sshll.u32 %s224_s0, 4  ;;  %s16_s14 = int_to_ptr.vmem [resolvable:$true] %s15_s14 }
   0x2   :  { %s126_s15 = scalar_lea.vmem %s16_s14, 16  ;;  %p131_p1 = scmp.lt.s32.totalorder %s16_s14, %s16_s14 }
   0x3   :  { %p127_p0 = scmp.ne.s32.totalorder %s16_s14, %s126_s15  ;;  %p132_p2 = scmp.lt.s32.totalorder %s126_s15, %s126_s15 }
   0x5   :  { %p133_p3 = por %p132_p2, %p131_p1 }
   0x7   :  { %p134_p4 = pnand %p133_p3, %p127_p0 }
   0x9   :  { %137 = shalt.err (!%p134_p4)
}
   0xa   :  { %s140_s16 = smov [#allocation2]  }
   0xb   :  { %18 = dma.vmem_to_smem %s16_s14, 16, %s140_s16, [#allocation3]  }
   0xc   :  { %138 = dma.done.wait [#allocation3], 16  }
   0xd   :  { %139 = vsyncadd [#allocation3], 4294967280 }
   0xe   :  { %26 = sfence }
   0xf   :  { %s27_s17 = sld [smem:[#allocation2]]  ;;  %s114_s18 = sld [smem:[#allocation2 + $0x1]]  ;;  %v44_v0 = vlaneseq  ;;  %v28_v1 = vld [vmem:[%s225_s1] sm:$0x1]  ;;  %v32_v2 = vld [vmem:[%s225_s1 + $0x1] sm:$0x1] }
  0x10   :  { %s115_s19 = sld [smem:[#allocation2 + $0x2]]  ;;  %s116_s20 = sld [smem:[#allocation2 + $0x3]]  ;;  %v37_v3 = vld [vmem:[%s225_s1 + $0x2] sm:$0x1]  ;;  %v69_v10 = vld [vmem:[%s225_s1] sm:$0x1] }
  0x11   :  { %s117_s24 = sld [smem:[#allocation2 + $0x4]]  ;;  %v45_v4 = vshrl.u32 %v44_v0, 7  ;;  %s118_s27 = sld [smem:[#allocation2 + $0x5]]  ;;  %v73_v12 = vld [vmem:[%s225_s1 + $0x1] sm:$0x1]  ;;  %v42_v23 = vld [vmem:[%s226_s2 + $0x8] sm:$0xff] }
  0x12   :  { %v78_v16 = vld [vmem:[%s225_s1 + $0x2] sm:$0x1]  ;;  %v43_v24 = vld [vmem:[%s226_s2 + $0x10] sm:$0x1f]  ;;  %v119_v32 = vld [vmem:[%s226_s2 + $0x18] sm:$0xff]  ;;  %vm63_vm0 = vcmask 64512  }
  0x13   :  { %v46_v14 = vsub.s32 0, %v45_v4  ;;  %v41_v22 = vld [vmem:[%s226_s2] sm:$0xff]  ;;  %v121_v34 = vld [vmem:[%s226_s2 + $0x28] sm:$0x1f]  ;;  %vm66_vm1 = vcmask 61440  }
  0x14   :  { %v120_v33 = vld [vmem:[%s226_s2 + $0x20] sm:$0xff] }
  0x15   :  { %v29_v5 = vstv %s27_s17  ;;  %v33_v6 = vstv %s114_s18 }
  0x16   :  { %v30_v7 = vmul.f32 %v29_v5, %v28_v1  ;;  %v34_v8 = vmul.f32 %v33_v6, %v32_v2  ;;  %v38_v9 = vstv %s115_s19  ;;  %v70_v15 = vstv %s116_s20 }
  0x17   :  { %v39_v11 = vmul.f32 %v38_v9, %v37_v3  ;;  %v71_v17 = vmul.f32 %v70_v15, %v69_v10  ;;  %v74_v18 = vstv %s117_s24  ;;  %v79_v21 = vstv %s118_s27 }
  0x18   :  { %v35_v13 = vadd.f32 %v34_v8, %v30_v7  ;;  %v75_v20 = vmul.f32 %v74_v18, %v73_v12  ;;  %v80_v25 = vmul.f32 %v79_v21, %v78_v16 }
  0x1a   :  { %v40_v19 = vadd.f32 %v39_v11, %v35_v13  ;;  %v76_v27 = vadd.f32 %v75_v20, %v71_v17 }
  0x1c   :  { %v47_v26 = vrot.slane %v40_v19, %v46_v14  ;;  %v81_v31 = vadd.f32 %v80_v25, %v76_v27 }
  0x1e   :  { %v48_v28 = vadd.f32 %v47_v26, %v41_v22  ;;  %v49_v29 = vadd.f32 %v47_v26, %v42_v23  ;;  %v50_v30 = vadd.f32 %v47_v26, %v43_v24  ;;  %v89_v38 = vrot.slane %v81_v31, %v46_v14 }
  0x20   :  { %v51_v35 = vmul.f32 0.16666667, %v48_v28  ;;  %v52_v36 = vmul.f32 0.16666667, %v49_v29  ;;  %v53_v37 = vmul.f32 0.16666667, %v50_v30  ;;  %v90_v42 = vadd.f32 %v119_v32, %v89_v38 }
  0x21   :  { %v91_v43 = vadd.f32 %v120_v33, %v89_v38  ;;  %v92_v44 = vadd.f32 %v121_v34, %v89_v38 }
  0x22   :  { %v54_v39 = vadd.f32 0.5, %v51_v35  ;;  %v55_v40 = vadd.f32 0.5, %v52_v36  ;;  %v56_v41 = vadd.f32 0.5, %v53_v37  ;;  %v93_v48 = vmul.f32 0.16666667, %v90_v42 }
  0x23   :  { %v94_v49 = vmul.f32 0.16666667, %v91_v43  ;;  %v95_v50 = vmul.f32 0.16666667, %v92_v44 }
  0x24   :  { %v57_v45 = vmax.f32 %v54_v39, 0.0  ;;  %v58_v46 = vmax.f32 %v55_v40, 0.0  ;;  %v59_v47 = vmax.f32 %v56_v41, 0.0  ;;  %v96_v54 = vadd.f32 0.5, %v93_v48 }
  0x25   :  { %v97_v55 = vadd.f32 0.5, %v94_v49  ;;  %v98_v56 = vadd.f32 0.5, %v95_v50 }
  0x26   :  { %v60_v51 = vadd.f32 0.16666667, %v57_v45  ;;  %v61_v52 = vadd.f32 0.16666667, %v58_v46  ;;  %v62_v53 = vadd.f32 0.16666667, %v59_v47 }
  0x27   :  { %v99_v57 = vmax.f32 %v96_v54, 0.0  ;;  %v100_v58 = vmax.f32 %v97_v55, 0.0  ;;  %v101_v59 = vmax.f32 %v98_v56, 0.0 }
  0x28   :  { %64 = vst.msk [vmem:[%s227_s3] sm:$0xff] %vm63_vm0, %v60_v51  ;;  %65 = vst.msk [vmem:[%s227_s3 + $0x8] sm:$0xff] %vm63_vm0, %v61_v52 }
  0x29   :  { %67 = vst.msk [vmem:[%s227_s3 + $0x10] sm:$0x1f] %vm66_vm1, %v62_v53  ;;  %v102_v60 = vadd.f32 0.16666667, %v99_v57  ;;  %v103_v61 = vadd.f32 0.16666667, %v100_v58 }
  0x2a   :  { %v104_v62 = vadd.f32 0.16666667, %v101_v59 }
  0x2b   :  { %122 = vst.msk [vmem:[%s227_s3 + $0x18] sm:$0xff] %vm63_vm0, %v102_v60  ;;  %123 = vst.msk [vmem:[%s227_s3 + $0x20] sm:$0xff] %vm63_vm0, %v103_v61 }
  0x2c   :  { %124 = vst.msk [vmem:[%s227_s3 + $0x28] sm:$0x1f] %vm66_vm1, %v104_v62 }
  0x2d   :  { %113 = vsyncpa [#allocation3], 1 }

</bundles_post_ra>
